<compile_context>
chip_gen: v5e
topology: v5e:2x2
jax: 0.10.0
libtpu: 0.0.40
codegen_flags: <defaults>
</compile_context>

<pallas_src>
import jax
import jax.numpy as jnp
from jax import lax
from jax.experimental import pallas as pl
from jax.experimental.pallas import tpu as pltpu


_SQRT_2_OVER_PI = 0.7978845608028654
_LN_EPS = 1e-5  # PyTorch nn.LayerNorm default eps


def _gelu_tanh(x):
    # TODO(synk): PyTorch nn.GELU() defaults to the exact erf formulation; the
    # tanh approximation is used so the kernel lowers to plain VPU/EUP ops on
    # every TPU generation (max abs deviation ~1e-3).
    return 0.5 * x * (1.0 + jnp.tanh(_SQRT_2_OVER_PI * (x + 0.044715 * x * x * x)))


def _trunk(x_bf16, w1t_bf16, b1_f32, gamma_f32, beta_f32):
    """dense -> GELU -> LayerNorm on one row tile. bf16 MXU operands, f32 stats."""
    y = jnp.dot(x_bf16, w1t_bf16, preferred_element_type=jnp.float32) + b1_f32
    y = _gelu_tanh(y)
    mu = jnp.mean(y, axis=-1, keepdims=True)
    var = jnp.mean(jnp.square(y - mu), axis=-1, keepdims=True)
    h = (y - mu) * lax.rsqrt(var + _LN_EPS)
    return h * gamma_f32 + beta_f32


def _mlm_fused_kernel(x_ref, w1_ref, b1_ref, g_ref, beta_ref, w2_ref, b2_ref,
                      o_ref, h_ref):
    # Grid = (row tiles i ["parallel"], vocab tiles j ["arbitrary"]).
    # The trunk depends only on i: compute once per row tile, keep bf16 in VMEM.
    @pl.when(pl.program_id(1) == 0)
    def _():
        h_ref[...] = _trunk(x_ref[...], w1_ref[...], b1_ref[...],
                            g_ref[...], beta_ref[...]).astype(h_ref.dtype)

    # cls projection onto this vocab tile (canonical (M,K)@(K,N), lane-dense store).
    logits = jnp.dot(h_ref[...], w2_ref[...], preferred_element_type=jnp.float32)
    o_ref[...] = (logits + b2_ref[...]).astype(o_ref.dtype)


def _mlm_trunk_kernel(x_ref, w1_ref, b1_ref, g_ref, beta_ref, h_ref):
    h_ref[...] = _trunk(x_ref[...], w1_ref[...], b1_ref[...],
                        g_ref[...], beta_ref[...]).astype(h_ref.dtype)


def _mlm_proj_kernel(h_ref, w2_ref, b2_ref, o_ref):
    logits = jnp.dot(h_ref[...], w2_ref[...], preferred_element_type=jnp.float32)
    o_ref[...] = (logits + b2_ref[...]).astype(o_ref.dtype)


def _pick_tile(full, preferred, align):
    """Largest tile <= preferred that is a multiple of `align`, or the full dim."""
    if preferred >= full:
        return full
    t = (preferred // align) * align
    return t if t > 0 else full


def _vmem_limit_bytes(ws_bytes):
    """Explicit scoped-VMEM limit: working set + headroom, clamped to the chip."""
    try:
        cap = pltpu.get_tpu_info().vmem_capacity_bytes
    except Exception:  # pragma: no cover - conservative fallback (v7x = 64 MiB)
        cap = 64 * 1024 * 1024
    return int(min(max(ws_bytes * 5 // 4, 32 * 1024 * 1024), cap * 3 // 4))


def mlm_forward(x, dense_w, dense_b, ln_gamma, ln_beta, cls_w, cls_b,
                *, tn=512, tv=2048, out_dtype=None):
    """Masked-LM head forward.

    x:        (..., H)   activations (leading dims flattened to N rows)
    dense_w:  (H, H)     nn.Linear weight, PyTorch (out, in) layout
    dense_b:  (H,)
    ln_gamma: (H,)       LayerNorm weight
    ln_beta:  (H,)
    cls_w:    (V, H)     shared embedding weight (vocab, hidden)
    cls_b:    (V,)
    returns   (N, V) logits, N = prod(leading dims)
    """
    H = dense_w.shape[0]
    V = cls_w.shape[0]
    x2 = x.reshape(-1, H)
    N = x2.shape[0]
    out_dtype = jnp.dtype(out_dtype or x.dtype)
    out_elt = out_dtype.itemsize

    TN = _pick_tile(N, tn, 16)     # rows: >=16 sublane alignment for bf16 tiles
    TV = _pick_tile(V, tv, 128)    # vocab: lane alignment
    n_row = pl.cdiv(N, TN)
    n_voc = pl.cdiv(V, TV)

    # bf16 matmul operands in canonical (M,K)@(K,N) layout (one-time wrapper cost).
    xb = x2.astype(jnp.bfloat16)
    w1t = dense_w.T.astype(jnp.bfloat16)          # (H, H)  K-major
    w2t = cls_w.T.astype(jnp.bfloat16)            # (H, V)
    b1 = dense_b.reshape(1, H).astype(jnp.float32)
    gamma = ln_gamma.reshape(1, H).astype(jnp.float32)
    beta = ln_beta.reshape(1, H).astype(jnp.float32)
    b2 = cls_b.reshape(1, V).astype(jnp.float32)

    # Double-buffered working set of the fused kernel (upper bound for both paths).
    # TODO(synk): grid-invariant operands (W1^T, biases, LN params) could use a
    # 1-deep pipeline_mode to free one buffer each; left at the default depth.
    ws = (2 * (TN * H * 2 + H * H * 2 + 3 * H * 4 + H * TV * 2 + TV * 4
               + TN * TV * out_elt)
          + TN * H * 2)
    vmem_limit = _vmem_limit_bytes(ws)

    if n_row == 1:
        # ---- Fused path: cls weight is streamed exactly once across the vocab axis.
        cost = pl.CostEstimate(
            flops=2 * N * H * H + 2 * N * H * V,
            transcendentals=N * H,
            bytes_accessed=(N * H * 2 + H * H * 2 + 3 * H * 4
                            + n_row * (V * H * 2 + V * 4)
                            + N * V * out_elt),
        )
        return pl.pallas_call(
            _mlm_fused_kernel,
            out_shape=jax.ShapeDtypeStruct((N, V), out_dtype),
            grid_spec=pltpu.PrefetchScalarGridSpec(
                num_scalar_prefetch=0,
                grid=(n_row, n_voc),
                in_specs=[
                    pl.BlockSpec((TN, H), lambda i, j: (i, 0)),   # x rows (bf16)
                    pl.BlockSpec((H, H), lambda i, j: (0, 0)),    # W1^T (bf16)
                    pl.BlockSpec((1, H), lambda i, j: (0, 0)),    # dense bias
                    pl.BlockSpec((1, H), lambda i, j: (0, 0)),    # LN gamma
                    pl.BlockSpec((1, H), lambda i, j: (0, 0)),    # LN beta
                    pl.BlockSpec((H, TV), lambda i, j: (0, j)),   # W2^T tile (bf16)
                    pl.BlockSpec((1, TV), lambda i, j: (0, j)),   # cls bias tile
                ],
                out_specs=pl.BlockSpec((TN, TV), lambda i, j: (i, j)),
                scratch_shapes=[pltpu.VMEM((TN, H), jnp.bfloat16)],
            ),
            compiler_params=pltpu.CompilerParams(
                dimension_semantics=("parallel", "arbitrary"),
                vmem_limit_bytes=vmem_limit,
            ),
            cost_estimate=cost,
        )(xb, w1t, b1, gamma, beta, w2t, b2)

    # ---- Split path (N spans multiple row tiles): trunk kernel + vocab-outer matmul.
    trunk_cost = pl.CostEstimate(
        flops=2 * N * H * H,
        transcendentals=N * H,
        bytes_accessed=2 * N * H * 2 + H * H * 2 + 3 * H * 4,
    )
    h = pl.pallas_call(
        _mlm_trunk_kernel,
        out_shape=jax.ShapeDtypeStruct((N, H), jnp.bfloat16),
        grid_spec=pltpu.PrefetchScalarGridSpec(
            num_scalar_prefetch=0,
            grid=(n_row,),
            in_specs=[
                pl.BlockSpec((TN, H), lambda i: (i, 0)),
                pl.BlockSpec((H, H), lambda i: (0, 0)),
                pl.BlockSpec((1, H), lambda i: (0, 0)),
                pl.BlockSpec((1, H), lambda i: (0, 0)),
                pl.BlockSpec((1, H), lambda i: (0, 0)),
            ],
            out_specs=pl.BlockSpec((TN, H), lambda i: (i, 0)),
        ),
        compiler_params=pltpu.CompilerParams(
            dimension_semantics=("parallel",),
            vmem_limit_bytes=vmem_limit,
        ),
        cost_estimate=trunk_cost,
    )(xb, w1t, b1, gamma, beta)

    # Vocab axis OUTER, rows inner: each W2^T tile's block index is constant over
    # the inner loop, so the V*H weight is DMA'd from HBM exactly once in total.
    proj_cost = pl.CostEstimate(
        flops=2 * N * H * V,
        transcendentals=0,
        bytes_accessed=(V * H * 2 + V * 4 + n_voc * N * H * 2 + N * V * out_elt),
    )
    return pl.pallas_call(
        _mlm_proj_kernel,
        out_shape=jax.ShapeDtypeStruct((N, V), out_dtype),
        grid_spec=pltpu.PrefetchScalarGridSpec(
            num_scalar_prefetch=0,
            grid=(n_voc, n_row),
            in_specs=[
                pl.BlockSpec((TN, H), lambda j, i: (i, 0)),    # h rows (bf16)
                pl.BlockSpec((H, TV), lambda j, i: (0, j)),    # W2^T tile (bf16)
                pl.BlockSpec((1, TV), lambda j, i: (0, j)),    # cls bias tile
            ],
            out_specs=pl.BlockSpec((TN, TV), lambda j, i: (i, j)),
        ),
        compiler_params=pltpu.CompilerParams(
            dimension_semantics=("parallel", "arbitrary"),
            vmem_limit_bytes=vmem_limit,
        ),
        cost_estimate=proj_cost,
    )(h, w2t, b2)


def mlm_reference(x, dense_w, dense_b, ln_gamma, ln_beta, cls_w, cls_b):
    """Pure-JAX f32 reference with identical semantics."""
    H = dense_w.shape[0]
    x2 = x.reshape(-1, H)
    y = _gelu_tanh(x2 @ dense_w.T + dense_b)
    mu = jnp.mean(y, axis=-1, keepdims=True)
    var = jnp.mean(jnp.square(y - mu), axis=-1, keepdims=True)
    h = (y - mu) * lax.rsqrt(var + _LN_EPS) * ln_gamma + ln_beta
    return h @ cls_w.T + cls_b


def init_params(key, dim_model, vocab_size, init_range):
    """Deterministic synthetic init mirroring the PyTorch module's __init__."""
    k_dense, k_ln, k_emb = jax.random.split(key, 3)
    dense_w = jax.random.truncated_normal(
        k_dense, -2.0, 2.0, (dim_model, dim_model), jnp.float32) * init_range
    dense_b = jnp.zeros((dim_model,), jnp.float32)
    ln_gamma = jax.random.truncated_normal(
        k_ln, -2.0, 2.0, (dim_model,), jnp.float32) * init_range
    ln_beta = jnp.zeros((dim_model,), jnp.float32)
    # cls_layer.weight is tied to sharing_embedding.weight (vocab, hidden).
    cls_w = jax.random.normal(k_emb, (vocab_size, dim_model), jnp.float32)
    cls_b = jnp.zeros((vocab_size,), jnp.float32)
    return dense_w, dense_b, ln_gamma, ln_beta, cls_w, cls_b


if __name__ == "__main__":
    config = {"dim_model": 32, "vocab_size": 256, "init_range": 0.02}
    B, S = 2, 16  # batch, sequence -> N = 32 masked tokens

    key = jax.random.PRNGKey(0)
    k_params, k_x = jax.random.split(key)
    params = init_params(k_params, config["dim_model"], config["vocab_size"],
                         config["init_range"])
    x = jax.random.normal(k_x, (B, S, config["dim_model"]), jnp.float32)

    ref = mlm_reference(x, *params)

    # Fused path: one row tile -> single kernel, cls weight streamed once.
    out_fused = jax.block_until_ready(mlm_forward(x, *params))
    # Split path: small tiles force >1 row tile -> trunk kernel + vocab-outer matmul.
    out_split = jax.block_until_ready(mlm_forward(x, *params, tn=16, tv=128))

    assert out_fused.shape == (B * S, config["vocab_size"])
    assert out_split.shape == (B * S, config["vocab_size"])
    err_f = float(jnp.max(jnp.abs(out_fused - ref)))
    err_s = float(jnp.max(jnp.abs(out_split - ref)))
    assert jnp.allclose(out_fused, ref, atol=3e-2, rtol=3e-2), err_f
    assert jnp.allclose(out_split, ref, atol=3e-2, rtol=3e-2), err_s

    print("KERNEL_OK")
</pallas_src>

<mosaic_0001>
module attributes {stable_mosaic.version = 11 : i64} {
  func.func @_mlm_fused_kernel(%arg0: i32, %arg1: i32, %arg2: memref<32x32xbf16, #tpu.memory_space<vmem>>, %arg3: memref<32x32xbf16, #tpu.memory_space<vmem>>, %arg4: memref<1x32xf32, #tpu.memory_space<vmem>>, %arg5: memref<1x32xf32, #tpu.memory_space<vmem>>, %arg6: memref<1x32xf32, #tpu.memory_space<vmem>>, %arg7: memref<32x256xbf16, #tpu.memory_space<vmem>>, %arg8: memref<1x256xf32, #tpu.memory_space<vmem>>, %arg9: memref<32x256xf32, #tpu.memory_space<vmem>>, %arg10: memref<32x32xbf16, #tpu.memory_space<vmem>>) attributes {dimension_semantics = [#tpu.dimension_semantics<parallel>, #tpu.dimension_semantics<arbitrary>], iteration_bounds = array<i64: 1, 1>, scalar_prefetch = 0 : i64, scratch_operands = 1 : i64, tpu.core_type = #tpu.core_type<tc>, window_params = [{transform_indices = @transform_0, window_bounds = array<i64: 32, 32>}, {pipeline_mode = #tpu.pipeline_mode<synchronous>, transform_indices = @transform_1, window_bounds = array<i64: 32, 32>}, {pipeline_mode = #tpu.pipeline_mode<synchronous>, transform_indices = @transform_2, window_bounds = array<i64: 1, 32>}, {pipeline_mode = #tpu.pipeline_mode<synchronous>, transform_indices = @transform_3, window_bounds = array<i64: 1, 32>}, {pipeline_mode = #tpu.pipeline_mode<synchronous>, transform_indices = @transform_4, window_bounds = array<i64: 1, 32>}, {transform_indices = @transform_5, window_bounds = array<i64: 32, 256>}, {transform_indices = @transform_6, window_bounds = array<i64: 1, 256>}, {transform_indices = @transform_7, window_bounds = array<i64: 32, 256>}]} {
    %c0_i32 = arith.constant 0 : i32
    %0 = arith.cmpi eq, %arg1, %c0_i32 : i32
    %1 = arith.extui %0 : i1 to i32
    %c0_i32_0 = arith.constant 0 : i32
    %2 = arith.cmpi ne, %1, %c0_i32_0 : i32
    scf.if %2 {
      %c0_8 = arith.constant 0 : index
      %c0_9 = arith.constant 0 : index
      %10 = vector.load %arg2[%c0_8, %c0_9] : memref<32x32xbf16, #tpu.memory_space<vmem>>, vector<32x32xbf16>
      %c0_10 = arith.constant 0 : index
      %c0_11 = arith.constant 0 : index
      %11 = vector.load %arg3[%c0_10, %c0_11] : memref<32x32xbf16, #tpu.memory_space<vmem>>, vector<32x32xbf16>
      %c0_12 = arith.constant 0 : index
      %c0_13 = arith.constant 0 : index
      %12 = vector.load %arg4[%c0_12, %c0_13] : memref<1x32xf32, #tpu.memory_space<vmem>>, vector<1x32xf32>
      %c0_14 = arith.constant 0 : index
      %c0_15 = arith.constant 0 : index
      %13 = vector.load %arg5[%c0_14, %c0_15] : memref<1x32xf32, #tpu.memory_space<vmem>>, vector<1x32xf32>
      %c0_16 = arith.constant 0 : index
      %c0_17 = arith.constant 0 : index
      %14 = vector.load %arg6[%c0_16, %c0_17] : memref<1x32xf32, #tpu.memory_space<vmem>>, vector<1x32xf32>
      %cst_18 = arith.constant dense<0.000000e+00> : vector<32x32xf32>
      %15 = tpu.matmul %10, %11, %cst_18 {dimension_numbers = #tpu.dot_dimension_numbers<[1], [0], [0], [1], [0, 0, 1, 1], [], []>} : vector<32x32xbf16>, vector<32x32xbf16>, vector<32x32xf32> -> vector<32x32xf32>
      %16 = vector.broadcast %12 : vector<1x32xf32> to vector<32x32xf32>
      %17 = arith.addf %15, %16 : vector<32x32xf32>
      %cst_19 = arith.constant 5.000000e-01 : f32
      %18 = vector.broadcast %cst_19 : f32 to vector<32x32xf32>
      %19 = arith.mulf %18, %17 : vector<32x32xf32>
      %cst_20 = arith.constant 4.471500e-02 : f32
      %20 = vector.broadcast %cst_20 : f32 to vector<32x32xf32>
      %21 = arith.mulf %20, %17 : vector<32x32xf32>
      %22 = arith.mulf %21, %17 : vector<32x32xf32>
      %23 = arith.mulf %22, %17 : vector<32x32xf32>
      %24 = arith.addf %17, %23 : vector<32x32xf32>
      %cst_21 = arith.constant 0.797884583 : f32
      %25 = vector.broadcast %cst_21 : f32 to vector<32x32xf32>
      %26 = arith.mulf %25, %24 : vector<32x32xf32>
      %27 = math.tanh %26 : vector<32x32xf32>
      %cst_22 = arith.constant 1.000000e+00 : f32
      %28 = vector.broadcast %cst_22 : f32 to vector<32x32xf32>
      %29 = arith.addf %28, %27 : vector<32x32xf32>
      %30 = arith.mulf %19, %29 : vector<32x32xf32>
      %cst_23 = arith.constant dense<0.000000e+00> : vector<32xf32>
      %31 = vector.multi_reduction <add>, %30, %cst_23 [1] : vector<32x32xf32> to vector<32xf32>
      %32 = vector.shape_cast %31 : vector<32xf32> to vector<32x1xf32>
      %cst_24 = arith.constant 3.200000e+01 : f32
      %33 = vector.broadcast %cst_24 : f32 to vector<32x1xf32>
      %34 = arith.divf %32, %33 : vector<32x1xf32>
      %35 = vector.broadcast %34 : vector<32x1xf32> to vector<32x32xf32>
      %36 = arith.subf %30, %35 : vector<32x32xf32>
      %37 = arith.mulf %36, %36 : vector<32x32xf32>
      %cst_25 = arith.constant dense<0.000000e+00> : vector<32xf32>
      %38 = vector.multi_reduction <add>, %37, %cst_25 [1] : vector<32x32xf32> to vector<32xf32>
      %39 = vector.shape_cast %38 : vector<32xf32> to vector<32x1xf32>
      %cst_26 = arith.constant 3.200000e+01 : f32
      %40 = vector.broadcast %cst_26 : f32 to vector<32x1xf32>
      %41 = arith.divf %39, %40 : vector<32x1xf32>
      %42 = vector.broadcast %34 : vector<32x1xf32> to vector<32x32xf32>
      %43 = arith.subf %30, %42 : vector<32x32xf32>
      %cst_27 = arith.constant 9.99999974E-6 : f32
      %44 = vector.broadcast %cst_27 : f32 to vector<32x1xf32>
      %45 = arith.addf %41, %44 : vector<32x1xf32>
      %46 = math.rsqrt %45 : vector<32x1xf32>
      %47 = vector.broadcast %46 : vector<32x1xf32> to vector<32x32xf32>
      %48 = arith.mulf %43, %47 : vector<32x32xf32>
      %49 = vector.broadcast %13 : vector<1x32xf32> to vector<32x32xf32>
      %50 = arith.mulf %48, %49 : vector<32x32xf32>
      %51 = vector.broadcast %14 : vector<1x32xf32> to vector<32x32xf32>
      %52 = arith.addf %50, %51 : vector<32x32xf32>
      %53 = arith.truncf %52 : vector<32x32xf32> to vector<32x32xbf16>
      %c0_28 = arith.constant 0 : index
      %c0_29 = arith.constant 0 : index
      %54 = vector.load %arg10[%c0_28, %c0_29] : memref<32x32xbf16, #tpu.memory_space<vmem>>, vector<32x32xbf16>
      tpu.vector_store %arg10[%c0_28, %c0_29], %53 {strides = array<i32>} : memref<32x32xbf16, #tpu.memory_space<vmem>>, vector<32x32xbf16>,
    } else {
    }
    %c0 = arith.constant 0 : index
    %c0_1 = arith.constant 0 : index
    %3 = vector.load %arg10[%c0, %c0_1] : memref<32x32xbf16, #tpu.memory_space<vmem>>, vector<32x32xbf16>
    %c0_2 = arith.constant 0 : index
    %c0_3 = arith.constant 0 : index
    %4 = vector.load %arg7[%c0_2, %c0_3] : memref<32x256xbf16, #tpu.memory_space<vmem>>, vector<32x256xbf16>
    %cst = arith.constant dense<0.000000e+00> : vector<32x256xf32>
    %5 = tpu.matmul %3, %4, %cst {dimension_numbers = #tpu.dot_dimension_numbers<[1], [0], [0], [1], [0, 0, 1, 1], [], []>} : vector<32x32xbf16>, vector<32x256xbf16>, vector<32x256xf32> -> vector<32x256xf32>
    %c0_4 = arith.constant 0 : index
    %c0_5 = arith.constant 0 : index
    %6 = vector.load %arg8[%c0_4, %c0_5] : memref<1x256xf32, #tpu.memory_space<vmem>>, vector<1x256xf32>
    %7 = vector.broadcast %6 : vector<1x256xf32> to vector<32x256xf32>
    %8 = arith.addf %5, %7 : vector<32x256xf32>
    %c0_6 = arith.constant 0 : index
    %c0_7 = arith.constant 0 : index
    %9 = vector.load %arg9[%c0_6, %c0_7] : memref<32x256xf32, #tpu.memory_space<vmem>>, vector<32x256xf32>
    tpu.vector_store %arg9[%c0_6, %c0_7], %8 {strides = array<i32>} : memref<32x256xf32, #tpu.memory_space<vmem>>, vector<32x256xf32>,
    return
  }
  func.func @transform_0(%arg0: i32, %arg1: i32) -> (i32, i32) {
    %c0_i32 = arith.constant 0 : i32
    %c0_i32_0 = arith.constant 0 : i32
    return %arg0, %c0_i32 : i32, i32
  }
  func.func @transform_1(%arg0: i32, %arg1: i32) -> (i32, i32) {
    %c0_i32 = arith.constant 0 : i32
    %c0_i32_0 = arith.constant 0 : i32
    %c0_i32_1 = arith.constant 0 : i32
    return %c0_i32, %c0_i32_0 : i32, i32
  }
  func.func @transform_2(%arg0: i32, %arg1: i32) -> (i32, i32) {
    %c0_i32 = arith.constant 0 : i32
    %c0_i32_0 = arith.constant 0 : i32
    %c0_i32_1 = arith.constant 0 : i32
    return %c0_i32, %c0_i32_0 : i32, i32
  }
  func.func @transform_3(%arg0: i32, %arg1: i32) -> (i32, i32) {
    %c0_i32 = arith.constant 0 : i32
    %c0_i32_0 = arith.constant 0 : i32
    %c0_i32_1 = arith.constant 0 : i32
    return %c0_i32, %c0_i32_0 : i32, i32
  }
  func.func @transform_4(%arg0: i32, %arg1: i32) -> (i32, i32) {
    %c0_i32 = arith.constant 0 : i32
    %c0_i32_0 = arith.constant 0 : i32
    %c0_i32_1 = arith.constant 0 : i32
    return %c0_i32, %c0_i32_0 : i32, i32
  }
  func.func @transform_5(%arg0: i32, %arg1: i32) -> (i32, i32) {
    %c0_i32 = arith.constant 0 : i32
    %c0_i32_0 = arith.constant 0 : i32
    return %c0_i32, %arg1 : i32, i32
  }
  func.func @transform_6(%arg0: i32, %arg1: i32) -> (i32, i32) {
    %c0_i32 = arith.constant 0 : i32
    %c0_i32_0 = arith.constant 0 : i32
    return %c0_i32, %arg1 : i32, i32
  }
  func.func @transform_7(%arg0: i32, %arg1: i32) -> (i32, i32) {
    %c0_i32 = arith.constant 0 : i32
    return %arg0, %arg1 : i32, i32
  }
}

</mosaic_0001>

<bundles_post_ra>
// kernel: tpu_custom_call.1
= control target key start
LH: loop header
LB: loop body
LE: loop exit
PB: predicated region body
PF: predicated region fallthrough
CT: control target
= control target key end

     0   :  { %12 = vsyncpa [#allocation4], 0  ;;  %s799_s0 = inlined_call_operand.hbm [shape: bf16[32,32], index: 0, kind: input, shape index: {}]   ;;  %s800_s1 = inlined_call_operand.hbm [shape: bf16[32,32], index: 1, kind: input, shape index: {}]   ;;  %s801_s2 = inlined_call_operand.vmem [shape: f32[1,32], index: 2, kind: input, shape index: {}]   ;;  %s802_s3 = inlined_call_operand.hbm [shape: f32[1,32], index: 3, kind: input, shape index: {}]   ;;  %s803_s4 = inlined_call_operand.hbm [shape: f32[1,32], index: 4, kind: input, shape index: {}]   ;;  %s804_s5 = inlined_call_operand.hbm [shape: bf16[32,256], index: 5, kind: input, shape index: {}]   ;;  %s805_s6 = inlined_call_operand.vmem [shape: f32[1,256], index: 6, kind: input, shape index: {}]   ;;  %s806_s7 = inlined_call_operand.hbm [shape: f32[32,256], index: 7, kind: output, shape index: {}]  }
   0x1   :  { %13 = vsyncpa [#allocation7], 0 }
   0x2   :  { %14 = vsyncpa [#allocation10], 0 }
   0x3   :  { %15 = vsyncpa [#allocation5], 0  ;;  %s33_s26 = sshll.u32 %s800_s1, 4  ;;  %s684_s27 = smov [#allocation6]   ;;  %s34_s26 = int_to_ptr.hbm [resolvable:$true] %s33_s26 }
   0x4   :  { %s35_s28 = sshll.u32 %s684_s27, 4  ;;  %s60_s8 = sshll.u32 %s803_s4, 4  ;;  %s36_s28 = int_to_ptr.vmem [resolvable:$true] %s35_s28  ;;  %s61_s8 = int_to_ptr.hbm [resolvable:$true] %s60_s8 }
   0x5   :  { %s685_s9 = smov 64   ;;  %s686_s10 = smov 4  }
   0x6   :  { %41 = dma.hbm_to_vmem [thread:$0]  %s34_s26, 256, %s36_s28, [#allocation7], %s685_s9, %s685_s9, %s686_s10  }
   0x7   :  { %s687_s11 = smov [#allocation9]   ;;  %s20_s15 = sshll.u32 %s799_s0, 4  ;;  %s21_s15 = int_to_ptr.hbm [resolvable:$true] %s20_s15 }
   0x8   :  { %s62_s12 = sshll.u32 %s687_s11, 4  ;;  %s49_s17 = sshll.u32 %s802_s3, 4  ;;  %s63_s12 = int_to_ptr.vmem [resolvable:$true] %s62_s12  ;;  %s50_s17 = int_to_ptr.hbm [resolvable:$true] %s49_s17 }
   0x9   :  { %65 = dma.hbm_to_vmem [thread:$0]  %s61_s8, 16, %s63_s12, [#allocation10]  }
   0xa   :  { %s688_s18 = smov [#allocation3]   ;;  %s689_s4 = smov [#allocation8]  }
   0xb   :  { %s22_s19 = sshll.u32 %s688_s18, 4  ;;  %s51_s20 = sshll.u32 %s689_s4, 4  ;;  %s23_s19 = int_to_ptr.vmem [resolvable:$true] %s22_s19  ;;  %s52_s20 = int_to_ptr.vmem [resolvable:$true] %s51_s20 }
   0xc   :  { %28 = dma.hbm_to_vmem [thread:$0]  %s21_s15, 256, %s23_s19, [#allocation4], %s685_s9, %s685_s9, %s686_s10  }
   0xd   :  { %s70_s23 = sshll.u32 %s804_s5, 4  ;;  %s690_s0 = smov [#allocation11]   ;;  %s71_s23 = int_to_ptr.hbm [resolvable:$true] %s70_s23 }
   0xe   :  { %54 = dma.hbm_to_vmem [thread:$0]  %s50_s17, 16, %s52_s20, [#allocation7]  }
   0xf   :  { %s72_s24 = sshll.u32 %s690_s0, 4  ;;  %s691_s25 = smov 128   ;;  %s73_s24 = int_to_ptr.vmem [resolvable:$true] %s72_s24 }
  0x10   :  { %s692_s26 = smov 8  }
  0x11   :  { %78 = dma.hbm_to_vmem [thread:$0]  %s71_s23, 512, %s73_s24, [#allocation10], %s691_s25, %s691_s25, %s692_s26  }
  0x12   :  { %676 = dma.done.wait [#allocation4], 256  }
  0x13   :  { %677 = vsyncadd [#allocation4], 4294967040 }
  0x14   :  { %678 = dma.done.wait [#allocation7], 272  }
  0x15   :  { %679 = vsyncadd [#allocation7], 4294967024 }
  0x16   :  { %680 = dma.done.wait [#allocation10], 528  }
  0x17   :  { %681 = vsyncadd [#allocation10], 4294966768  ;;  %v489_v0 = vld [vmem:[#allocation6 + $0x8] sm:$0xff]  ;;  %v488_v1 = vld [vmem:[#allocation6] sm:$0xff]  ;;  %vm142_vm0 = vcmask 261120   ;;  %v693_v53 = vmov 32.0  }
  0x18   :  { %155 = vmatpush.bf16.msra.mxu0 %v489_v0  ;;  %496 = vmatpush.bf16.msra.mxu3 %v489_v0  ;;  %v486_v2 = vld [vmem:[#allocation3] sm:$0xff]  ;;  %v487_v3 = vld [vmem:[#allocation3 + $0x8] sm:$0xff]  ;;  %v511_v4 = vld [vmem:[%s801_s2] ss:$0 sm:$0xff]  ;;  %vm317_vm8 = vcmask 257024   ;;  %s425_s8 = sshll.u32 %s806_s7, 4  ;;  %s426_s8 = int_to_ptr.hbm [resolvable:$true] %s425_s8 }
  0x19   :  { %s695_s9 = smov 256   ;;  %s696_s10 = smov 16  }
  0x1c   :  { %156 = vmatpush.bf16.msra.mxu0 %v488_v1  ;;  %497 = vmatpush.bf16.msra.mxu3 %v488_v1 }
  0x1f   :  { %456 = vmatmul.msk.bf16.vlgmr.msra.gmra.mxu0 %vm142_vm0, %v486_v2  ;;  %457 = vmatmul.msk.bf16.vlgmr.msra.gmra.mxu3 %vm142_vm0, %v487_v3 }
  0x9c   :  { %v158_v5 = vpop.f32.mrf.mxu0 }
  0x9d   :  { %v159_v6 = vadd.f32 %v511_v4, %v158_v5 }
  0x9f   :  { %v172_v7 = vmul.f32 0.044715, %v159_v6  ;;  %v168_v31 = vmul.f32 0.5, %v159_v6 }
  0xa1   :  { %v176_v8 = vmul.f32 %v172_v7, %v159_v6 }
  0xa2   :  { %v163_v9 = vpop.f32.mrf.mxu3 }
  0xa3   :  { %v164_v10 = vadd.f32 %v511_v4, %v163_v9  ;;  %v180_v11 = vmul.f32 %v176_v8, %v159_v6 }
  0xa4   :  { %v160_v12 = vpop.f32.mrf.mxu0 }
  0xa5   :  { %v161_v13 = vadd.f32 %v511_v4, %v160_v12  ;;  %v184_v14 = vadd.f32 %v180_v11, %v159_v6  ;;  %v174_v15 = vmul.f32 0.044715, %v164_v10  ;;  %v170_v39 = vmul.f32 0.5, %v164_v10 }
  0xa7   :  { %v173_v16 = vmul.f32 0.044715, %v161_v13  ;;  %v188_v17 = vmul.f32 0.7978846, %v184_v14  ;;  %v178_v18 = vmul.f32 %v174_v15, %v164_v10  ;;  %v169_v43 = vmul.f32 0.5, %v161_v13 }
  0xa9   :  { %514 = vtanh.f32 %v188_v17  ;;  %v182_v19 = vmul.f32 %v178_v18, %v164_v10  ;;  %v177_v20 = vmul.f32 %v173_v16, %v161_v13 }
  0xaa   :  { %v165_v21 = vpop.f32.mrf.mxu3 }
  0xab   :  { %v166_v22 = vadd.f32 %v511_v4, %v165_v21  ;;  %v186_v23 = vadd.f32 %v182_v19, %v164_v10  ;;  %v181_v24 = vmul.f32 %v177_v20, %v161_v13  ;;  %v476_v20 = vld [vmem:[#allocation11 + $0x10] sm:$0xf]  ;;  %v495_v21 = vld [vmem:[#allocation11 + $0x14] sm:$0xf0] }
  0xad   :  { %v175_v25 = vmul.f32 0.044715, %v166_v22  ;;  %v190_v26 = vmul.f32 0.7978846, %v186_v23  ;;  %v185_v27 = vadd.f32 %v181_v24, %v161_v13  ;;  %v171_v49 = vmul.f32 0.5, %v166_v22 }
  0xae   :  { %v477_v24 = vor.u32 %v495_v21, %v476_v20 }
  0xaf   :  { %v515_v28 = vpop.eup %514  ;;  %516 = vtanh.f32 %v190_v26  ;;  %v189_v29 = vmul.f32 0.7978846, %v185_v27  ;;  %v179_v30 = vmul.f32 %v175_v25, %v166_v22  ;;  %v478_v25 = vld [vmem:[#allocation11 + $0x18] sm:$0xf0] }
  0xb0   :  { %v196_v32 = vadd.f32 1.0, %v515_v28  ;;  %379 = vmatpush.bf16.msra.mxu1 %v477_v24 }
  0xb1   :  { %518 = vtanh.f32 %v189_v29  ;;  %v183_v33 = vmul.f32 %v179_v30, %v166_v22  ;;  %v468_v30 = vld [vmem:[#allocation11] sm:$0xf] }
  0xb2   :  { %v200_v34 = vmul.f32 %v196_v32, %v168_v31  ;;  %v493_v31 = vld [vmem:[#allocation11 + $0x4] sm:$0xf0]  ;;  %v492_v32 = vld [vmem:[#allocation11 + $0x4] sm:$0xf] }
  0xb3   :  { %v187_v35 = vadd.f32 %v183_v33, %v166_v22  ;;  %v494_v22 = vld [vmem:[#allocation11 + $0x14] sm:$0xf] }
  0xb4   :  { %v204_v36 = vsel %vm142_vm0, %v200_v34, 0.0  ;;  %v481_v27 = vor.u32 %v494_v22, %v478_v25 }
  0xb5   :  { %v517_v37 = vpop.eup %516  ;;  %205 = vadd.xlane.f32.xlu0 %v204_v36  ;;  %v191_v38 = vmul.f32 0.7978846, %v187_v35  ;;  %v469_v35 = vor.u32 %v493_v31, %v468_v30  ;;  %v470_v36 = vld [vmem:[#allocation11 + $0x8] sm:$0xf0] }
  0xb6   :  { %v198_v40 = vadd.f32 1.0, %v517_v37  ;;  %398 = vmatpush.bf16.msra.mxu2 %v481_v27 }
  0xb7   :  { %v519_v41 = vpop.eup %518  ;;  %520 = vtanh.f32 %v191_v38  ;;  %v473_v38 = vor.u32 %v492_v32, %v470_v36  ;;  %380 = vmatpush.bf16.msra.mxu1 %v469_v35 }
  0xb8   :  { %v202_v42 = vmul.f32 %v198_v40, %v170_v39  ;;  %v197_v44 = vadd.f32 1.0, %v519_v41  ;;  %522 = vrcp.f32 %v693_v53 }
  0xba   :  { %v210_v45 = vsel %vm142_vm0, %v202_v42, 0.0  ;;  %v201_v46 = vmul.f32 %v197_v44, %v169_v43  ;;  %399 = vmatpush.bf16.msra.mxu2 %v473_v38 }
  0xbb   :  { %211 = vadd.xlane.f32.xlu1 %v210_v45 }
  0xbc   :  { %v207_v47 = vsel %vm142_vm0, %v201_v46, 0.0 }
  0xbd   :  { %v521_v48 = vpop.eup %520  ;;  %208 = vadd.xlane.f32.xlu0 %v207_v47 }
  0xbe   :  { %v199_v50 = vadd.f32 1.0, %v521_v48  ;;  %v523_v54 = vpop.eup %522 }
  0xbf   :  { %v217_v55 = vmul.f32 32.0, %v523_v54  ;;  %vm221_vm1 = vweird.f32 %v523_v54 }
  0xc0   :  { %v203_v51 = vmul.f32 %v199_v50, %v171_v49 }
  0xc1   :  { %v218_v56 = vsub.f32 1.0, %v217_v55  ;;  %v513_v55 = vld [vmem:[#allocation9] ss:$0 sm:$0xff] }
  0xc2   :  { %v213_v52 = vsel %vm142_vm0, %v203_v51, 0.0 }
  0xc3   :  { %214 = vadd.xlane.f32.xlu1 %v213_v52  ;;  %v219_v57 = vmul.f32 %v523_v54, %v218_v56 }
  0xc5   :  { %v220_v58 = vadd.f32 %v523_v54, %v219_v57 }
  0xc7   :  { %v222_v59 = vsel %vm221_vm1, %v523_v54, %v220_v58 }
 0x128   :  { %v206_v60 = vpop.xlane.xlu0 %205 }
 0x129   :  { %v223_v61 = vmul.f32 %v222_v59, %v206_v60 }
 0x12b   :  { %v761_v62 = vsub.f32 %v200_v34, %v223_v61 }
 0x12d   :  { %v231_v63 = vmul.f32 %v761_v62, %v761_v62 }
 0x12e   :  { %v212_v0 = vpop.xlane.xlu1 %211 }
 0x12f   :  { %v225_v1 = vmul.f32 %v222_v59, %v212_v0  ;;  %v235_v2 = vsel %vm142_vm0, %v231_v63, 0.0 }
 0x130   :  { %236 = vadd.xlane.f32.xlu2 %v235_v2  ;;  %v209_v3 = vpop.xlane.xlu0 %208 }
 0x131   :  { %v766_v4 = vsub.f32 %v202_v42, %v225_v1  ;;  %v224_v5 = vmul.f32 %v222_v59, %v209_v3 }
 0x133   :  { %v768_v6 = vsub.f32 %v201_v46, %v224_v5  ;;  %v233_v7 = vmul.f32 %v766_v4, %v766_v4 }
 0x135   :  { %v241_v8 = vsel %vm142_vm0, %v233_v7, 0.0  ;;  %v232_v9 = vmul.f32 %v768_v6, %v768_v6 }
 0x136   :  { %v215_v10 = vpop.xlane.xlu1 %214  ;;  %242 = vadd.xlane.f32.xlu0 %v241_v8 }
 0x137   :  { %v226_v11 = vmul.f32 %v222_v59, %v215_v10  ;;  %v238_v12 = vsel %vm142_vm0, %v232_v9, 0.0 }
 0x138   :  { %239 = vadd.xlane.f32.xlu2 %v238_v12 }
 0x139   :  { %v776_v13 = vsub.f32 %v203_v51, %v226_v11  ;;  %v512_v51 = vld [vmem:[#allocation8] ss:$0 sm:$0xff] }
 0x13b   :  { %v234_v14 = vmul.f32 %v776_v13, %v776_v13 }
 0x13d   :  { %v244_v15 = vsel %vm142_vm0, %v234_v14, 0.0 }
 0x13e   :  { %245 = vadd.xlane.f32.xlu1 %v244_v15 }
 0x1a3   :  { %v237_v16 = vpop.xlane.xlu2 %236 }
 0x1a4   :  { %v247_v17 = vmul.f32 %v237_v16, %v222_v59 }
 0x1a6   :  { %v251_v18 = vadd.f32 1e-05, %v247_v17 }
 0x1a8   :  { %524 = vrsqrt.f32 %v251_v18  ;;  %vm261_vm3 = vweird.f32 %v251_v18 }
 0x1a9   :  { %v243_v19 = vpop.xlane.xlu0 %242 }
 0x1aa   :  { %v249_v23 = vmul.f32 %v243_v19, %v222_v59 }
 0x1ab   :  { %v240_v26 = vpop.xlane.xlu2 %239 }
 0x1ac   :  { %v253_v28 = vadd.f32 1e-05, %v249_v23  ;;  %v248_v29 = vmul.f32 %v240_v26, %v222_v59 }
 0x1ae   :  { %v525_v33 = vpop.eup %524  ;;  %526 = vrsqrt.f32 %v253_v28  ;;  %v252_v34 = vadd.f32 1e-05, %v248_v29  ;;  %vm281_vm6 = vweird.f32 %v253_v28 }
 0x1af   :  { %v256_v37 = vmul.f32 %v525_v33, %v251_v18  ;;  %vm262_vm2 = vweird.f32 %v525_v33 }
 0x1b0   :  { %528 = vrsqrt.f32 %v252_v34  ;;  %vm263_vm4 = vmor %vm261_vm3, %vm262_vm2  ;;  %vm271_vm10 = vweird.f32 %v252_v34 }
 0x1b1   :  { %v257_v39 = vmul.f32 %v525_v33, %v256_v37  ;;  %v246_v40 = vpop.xlane.xlu1 %245 }
 0x1b2   :  { %v250_v41 = vmul.f32 %v246_v40, %v222_v59 }
 0x1b3   :  { %v258_v42 = vmul.f32 0.5, %v257_v39 }
 0x1b4   :  { %v527_v43 = vpop.eup %526  ;;  %v254_v44 = vadd.f32 1e-05, %v250_v41 }
 0x1b5   :  { %v259_v45 = vsub.f32 1.5, %v258_v42  ;;  %v276_v46 = vmul.f32 %v527_v43, %v253_v28  ;;  %vm282_vm5 = vweird.f32 %v527_v43 }
 0x1b6   :  { %v529_v47 = vpop.eup %528  ;;  %530 = vrsqrt.f32 %v254_v44  ;;  %vm283_vm9 = vmor %vm281_vm6, %vm282_vm5  ;;  %vm291_vm13 = vweird.f32 %v254_v44 }
 0x1b7   :  { %v260_v48 = vmul.f32 %v525_v33, %v259_v45  ;;  %v277_v49 = vmul.f32 %v527_v43, %v276_v46  ;;  %v266_v50 = vmul.f32 %v529_v47, %v252_v34  ;;  %vm272_vm7 = vweird.f32 %v529_v47 }
 0x1b8   :  { %vm273_vm11 = vmor %vm271_vm10, %vm272_vm7 }
 0x1b9   :  { %v264_v52 = vsel %vm263_vm4, %v525_v33, %v260_v48  ;;  %v278_v53 = vmul.f32 0.5, %v277_v49  ;;  %v267_v54 = vmul.f32 %v529_v47, %v266_v50 }
 0x1ba   :  { %v295_v56 = vmul.f32 %v264_v52, %v761_v62 }
 0x1bb   :  { %v279_v57 = vsub.f32 1.5, %v278_v53  ;;  %v268_v58 = vmul.f32 0.5, %v267_v54 }
 0x1bc   :  { %v531_v59 = vpop.eup %530  ;;  %v302_v60 = vmul.f32 %v512_v51, %v295_v56 }
 0x1bd   :  { %v280_v61 = vmul.f32 %v527_v43, %v279_v57  ;;  %v269_v63 = vsub.f32 1.5, %v268_v58  ;;  %v286_v0 = vmul.f32 %v531_v59, %v254_v44  ;;  %vm292_vm12 = vweird.f32 %v531_v59 }
 0x1be   :  { %v309_v1 = vadd.f32 %v513_v55, %v302_v60  ;;  %vm293_vm14 = vmor %vm291_vm13, %vm292_vm12 }
 0x1bf   :  { %v284_v2 = vsel %vm283_vm9, %v527_v43, %v280_v61  ;;  %v270_v3 = vmul.f32 %v529_v47, %v269_v63  ;;  %v287_v5 = vmul.f32 %v531_v59, %v286_v0 }
 0x1c0   :  { %v313_v7 = vpack.c.bf16 %v309_v1, %v309_v1  ;;  %v297_v62 = vmul.f32 %v284_v2, %v766_v4 }
 0x1c1   :  { %v274_v8 = vsel %vm273_vm11, %v529_v47, %v270_v3  ;;  %v288_v9 = vmul.f32 0.5, %v287_v5 }
 0x1c2   :  { %318 = vst.msk [vmem:[#allocation2] sm:$0xf] %vm317_vm8, %v313_v7  ;;  %v304_v10 = vmul.f32 %v512_v51, %v297_v62  ;;  %v296_v11 = vmul.f32 %v274_v8, %v768_v6 }
 0x1c3   :  { %v289_v12 = vsub.f32 1.5, %v288_v9 }
 0x1c4   :  { %v311_v14 = vadd.f32 %v513_v55, %v304_v10  ;;  %v303_v15 = vmul.f32 %v512_v51, %v296_v11 }
 0x1c5   :  { %v290_v16 = vmul.f32 %v531_v59, %v289_v12 }
 0x1c6   :  { %v315_v17 = vpack.c.bf16 %v311_v14, %v311_v14  ;;  %v310_v18 = vadd.f32 %v513_v55, %v303_v15 }
 0x1c7   :  { %v294_v19 = vsel %vm293_vm14, %v531_v59, %v290_v16 }
 0x1c8   :  { %320 = vst.msk [vmem:[#allocation2 + $0x8] sm:$0xf] %vm317_vm8, %v315_v17  ;;  %v314_v4 = vpack.c.bf16 %v310_v18, %v310_v18  ;;  %v298_v20 = vmul.f32 %v294_v19, %v776_v13  ;;  %v330_v13 = vld [vmem:[%s805_s6] sm:$0x3]  ;;  %s694_s6 = smov [#allocation12]  }
 0x1c9   :  { %v332_v25 = vperm.slane %v330_v13, 0  ;;  %v333_v28 = vperm.slane %v330_v13, 1  ;;  %s423_s28 = sshll.u32 %s694_s6, 4  ;;  %s424_s28 = int_to_ptr.vmem [resolvable:$true] %s423_s28 }
 0x1ca   :  { %319 = vst.msk [vmem:[#allocation2 + $0x4] sm:$0xf] %vm317_vm8, %v314_v4  ;;  %v305_v21 = vmul.f32 %v512_v51, %v298_v20 }
 0x1cc   :  { %v312_v22 = vadd.f32 %v513_v55, %v305_v21 }
 0x1ce   :  { %v316_v6 = vpack.c.bf16 %v312_v22, %v312_v22 }
 0x1d0   :  { %321 = vst.msk [vmem:[#allocation2 + $0xc] sm:$0xf] %vm317_vm8, %v316_v6 }
 0x1d1   :  { %v490_v23 = vld [vmem:[#allocation2] sm:$0xff] }
 0x1d2   :  { %482 = vmatmul.msk.bf16.vlgmr.msra.gmra.mxu1 %vm142_vm0, %v490_v23  ;;  %484 = vmatmul.msk.bf16.vlgmr.msra.gmra.mxu2 %vm142_vm0, %v490_v23 }
 0x1d7   :  { %v491_v24 = vld [vmem:[#allocation2 + $0x8] sm:$0xff] }
 0x1e2   :  { %483 = vmatmul.msk.bf16.gmra.mxu1 %vm142_vm0, %v491_v24  ;;  %485 = vmatmul.msk.bf16.gmra.mxu2 %vm142_vm0, %v491_v24 }
 0x24f   :  { %v382_v26 = vpop.f32.mrf.mxu1 }
 0x250   :  { %v383_v27 = vadd.f32 %v382_v26, %v332_v25 }
 0x252   :  { %411 = vst [vmem:[#allocation12] sm:$0xff] %v383_v27 }
 0x255   :  { %v401_v29 = vpop.f32.mrf.mxu2 }
 0x256   :  { %v402_v30 = vadd.f32 %v401_v29, %v333_v28 }
 0x257   :  { %v384_v31 = vpop.f32.mrf.mxu1 }
 0x258   :  { %412 = vst [vmem:[#allocation12 + $0x8] sm:$0xff] %v402_v30  ;;  %v385_v32 = vadd.f32 %v384_v31, %v332_v25 }
 0x25a   :  { %413 = vst [vmem:[#allocation12 + $0x10] sm:$0xff] %v385_v32 }
 0x25d   :  { %v403_v33 = vpop.f32.mrf.mxu2 }
 0x25e   :  { %v404_v34 = vadd.f32 %v403_v33, %v333_v28 }
 0x25f   :  { %v387_v35 = vpop.f32.mrf.mxu1 }
 0x260   :  { %414 = vst [vmem:[#allocation12 + $0x18] sm:$0xff] %v404_v34  ;;  %v388_v36 = vadd.f32 %v387_v35, %v332_v25 }
 0x262   :  { %415 = vst [vmem:[#allocation12 + $0x20] sm:$0xff] %v388_v36 }
 0x265   :  { %v406_v37 = vpop.f32.mrf.mxu2 }
 0x266   :  { %v407_v38 = vadd.f32 %v406_v37, %v333_v28 }
 0x267   :  { %v389_v39 = vpop.f32.mrf.mxu1 }
 0x268   :  { %416 = vst [vmem:[#allocation12 + $0x28] sm:$0xff] %v407_v38  ;;  %v390_v40 = vadd.f32 %v389_v39, %v332_v25 }
 0x26a   :  { %417 = vst [vmem:[#allocation12 + $0x30] sm:$0xff] %v390_v40 }
 0x26d   :  { %v408_v41 = vpop.f32.mrf.mxu2 }
 0x26e   :  { %v409_v42 = vadd.f32 %v408_v41, %v333_v28 }
 0x270   :  { %418 = vst [vmem:[#allocation12 + $0x38] sm:$0xff] %v409_v42 }
 0x271   :  { %431 = dma.vmem_to_hbm [thread:$0]  %s424_s28, 1024, %s426_s8, [#allocation5], %s695_s9, %s695_s9, %s696_s10  }
 0x272   :  { %682 = dma.done.wait [#allocation5], 1024  }
 0x273   :  { %683 = vsyncadd [#allocation5], 4294966272 }
 0x274   :  { %436 = vsyncpa [#allocation4], 1 }
 0x275   :  { %437 = vsyncpa [#allocation7], 1 }
 0x276   :  { %438 = vsyncpa [#allocation10], 1 }
 0x277   :  { %439 = vsyncpa [#allocation5], 1 }

</bundles_post_ra>
